<compile_context>
chip_gen: v7x
topology: tpu7x:2x2x1
jax: 0.10.0
libtpu: 0.0.40
codegen_flags: <defaults>
</compile_context>

<pallas_src>
import functools

import jax
import jax.numpy as jnp
from jax.experimental import pallas as pl
from jax.experimental.pallas import tpu as pltpu


# ----------------------------------------------------------------------------
# Generation-aware helpers
# ----------------------------------------------------------------------------
def _round_up(x: int, m: int) -> int:
    return (x + m - 1) // m * m


@functools.lru_cache(maxsize=1)
def _tpu_generation():
    """(tensorcores_per_chip, vmem_capacity_bytes), with defensive fallbacks."""
    kind = ""
    try:
        kind = jax.devices()[0].device_kind.lower()
    except Exception:
        pass
    is_v7 = "v7" in kind
    cores = 2 if is_v7 else 1                    # v7x: 2 TCs/chip; v5e/v6e: 1
    vmem = (64 << 20) if is_v7 else (128 << 20)  # per-TC physical VMEM
    try:
        info = pltpu.get_tpu_info()
        v = getattr(info, "vmem_capacity_bytes", None)
        if v:
            vmem = int(v)
    except Exception:
        pass
    return cores, vmem


def _vmem_limit_bytes() -> int:
    """Scoped-VMEM limit: half of physical (32 MiB v7x, 64 MiB v5e/v6e)."""
    _, vmem_cap = _tpu_generation()
    return int(min(vmem_cap // 2, 64 << 20))


def _choose_tile_b(batch, d_in_pad, act_widths, out_widths, weight_bytes,
                   max_tile=4096):
    """Largest batch tile (multiple of 8; input/output tiles are f32) whose
    double-buffered input/output tiles + live f32 activations + (double-
    buffered) resident weights fit a generation-aware VMEM budget."""
    cores, vmem_cap = _tpu_generation()
    budget = min(vmem_cap // 2, 48 << 20)
    # f32 bytes per batch row: 2x-buffered input, 2x-buffered each output,
    # plus the widest live intermediate activation held in vregs/VMEM.
    per_row = 4 * (2 * d_in_pad + 2 * sum(out_widths) + max(act_widths))
    avail = budget - 2 * weight_bytes            # weights are double-buffered too
    fit = max(8, (avail // max(per_row, 1)) // 8 * 8)
    b8 = _round_up(max(batch, 1), 8)
    tile = int(min(max_tile, fit, b8))
    # v7x only: give each of the two TensorCores its own batch block, but only
    # when each half still clears the ~512-row roofline knee.  Single-core
    # chips (v5e/v6e) never split below one full-batch tile (a split just adds
    # a grid-step and shrinks tiles below the measured 512-row knee).
    if cores >= 2 and tile >= b8 and b8 >= 1024:
        tile = _round_up(pl.cdiv(b8, 2), 8)
    return int(tile)


# ----------------------------------------------------------------------------
# Fused MLP Pallas kernel: N x (matmul + bias [+ ReLU]) in one pallas_call,
# optionally emitting intermediate (hooked) activations as extra outputs.
# ----------------------------------------------------------------------------
def _fused_mlp_kernel(*refs, relu_flags, capture_idxs):
    """refs = (x_ref, w0, b0, w1, b1, ..., final_ref, cap_ref_0, cap_ref_1, ...).

    x is loaded in its storage dtype (f32) and cast to bf16 on the VPU right
    before each MXU matmul; accumulation / bias / ReLU are f32.  Intermediate
    activations stay in vregs/VMEM.  Outputs are written only over their valid
    (unpadded) columns — out refs are narrower than the padded weights.
    """
    n_layers = len(relu_flags)
    x_ref = refs[0]
    out_refs = refs[1 + 2 * n_layers:]
    final_ref = out_refs[0]
    cap_refs = dict(zip(capture_idxs, out_refs[1:]))

    h = x_ref[...]                                        # (tile_b, d_in) f32
    for i in range(n_layers):
        w = refs[1 + 2 * i][...]                          # (k_pad, n_pad) bf16
        b = refs[2 + 2 * i][...]                          # (1, n_pad) f32
        y = jnp.dot(h.astype(w.dtype), w, preferred_element_type=jnp.float32) + b
        if relu_flags[i]:
            y = jnp.maximum(y, 0.0)
        h = y                                             # f32
        if i in cap_refs:
            r = cap_refs[i]
            r[...] = h[:, : r.shape[1]].astype(r.dtype)
    final_ref[...] = h[:, : final_ref.shape[1]].astype(final_ref.dtype)


@functools.partial(jax.jit,
                   static_argnames=("relu_flags", "out_dims", "capture_idxs",
                                    "tile_b"))
def _fused_mlp(x, weights, biases, *, relu_flags, out_dims, capture_idxs, tile_b):
    """Returns (final, *captured): layer_{n-1}(...layer_0(x)...) plus the
    activation of every layer index in `capture_idxs`, from ONE pallas_call."""
    B, d_feat = x.shape
    d_in_pad = weights[0].shape[0]

    B_pad = _round_up(B, tile_b)
    if B_pad != B or d_in_pad != d_feat:
        xk = jnp.pad(x, ((0, B_pad - B), (0, d_in_pad - d_feat)))
    else:
        xk = x                                            # no host-side cast/pad pass

    in_specs = [pl.BlockSpec((tile_b, d_in_pad), lambda i: (i, 0))]
    operands = [xk]
    for w, b in zip(weights, biases):
        in_specs.append(pl.BlockSpec(w.shape, lambda i: (0, 0)))   # resident weights
        in_specs.append(pl.BlockSpec(b.shape, lambda i: (0, 0)))   # resident bias
        operands.extend((w, b))

    # Outputs carry only the valid columns (last dim == full array dim, legal),
    # so no padded-lane writeback and no post-kernel column slice.
    out_cols = (out_dims[-1],) + tuple(out_dims[i] for i in capture_idxs)
    out_shapes = tuple(jax.ShapeDtypeStruct((B_pad, c), jnp.float32) for c in out_cols)
    out_specs = [pl.BlockSpec((tile_b, c), lambda i: (i, 0)) for c in out_cols]

    kernel = functools.partial(_fused_mlp_kernel, relu_flags=relu_flags,
                               capture_idxs=capture_idxs)
    outs = pl.pallas_call(
        kernel,
        out_shape=out_shapes,
        grid_spec=pltpu.PrefetchScalarGridSpec(
            num_scalar_prefetch=0,
            grid=(B_pad // tile_b,),
            in_specs=in_specs,
            out_specs=out_specs,
        ),
        compiler_params=pltpu.CompilerParams(
            # TODO(synk): verify on v7x that "parallel" shards the batch axis
            # across both TensorCores; if not, switch to pltpu.CORE_PARALLEL.
            dimension_semantics=("parallel",),
            vmem_limit_bytes=_vmem_limit_bytes(),
        ),
    )(*operands)

    if B_pad != B:
        outs = tuple(o[:B] for o in outs)
    return outs


def run_fused(x, layers, capture_idxs=(), tile_b=None):
    """Run a list of PallasLinear layers as one fused pallas_call.

    Returns a tuple (final_output, *captured_activations)."""
    weights = tuple(l.w for l in layers)
    biases = tuple(l.b for l in layers)
    relu_flags = tuple(l.relu for l in layers)
    out_dims = tuple(l.d_out for l in layers)
    capture_idxs = tuple(capture_idxs)
    if tile_b is None:
        weight_bytes = sum(int(w.size) * w.dtype.itemsize for w in weights)
        weight_bytes += sum(int(b.size) * b.dtype.itemsize for b in biases)
        act_widths = tuple(l.out_pad for l in layers)
        out_widths = (out_dims[-1],) + tuple(out_dims[i] for i in capture_idxs)
        tile_b = _choose_tile_b(x.shape[0], int(weights[0].shape[0]),
                                act_widths, out_widths, weight_bytes)
    return _fused_mlp(x, weights, biases, relu_flags=relu_flags,
                      out_dims=out_dims, capture_idxs=capture_idxs,
                      tile_b=int(tile_b))


# ----------------------------------------------------------------------------
# Minimal "module" system mirroring the PyTorch structure
# ----------------------------------------------------------------------------
class PallasLinear:
    """One Linear(+ReLU) block.  Weights stored padded-to-128-lanes, bf16
    (MXU operands); bias stored f32, pre-reshaped to (1, out_pad)."""

    def __init__(self, w, b, relu=False, name="", in_pad=None):
        d_in, d_out = w.shape
        self.d_in, self.d_out = int(d_in), int(d_out)
        self.in_pad = int(in_pad) if in_pad is not None else self.d_in
        self.out_pad = _round_up(self.d_out, 128)
        wp = jnp.zeros((self.in_pad, self.out_pad), jnp.float32)
        wp = wp.at[:self.d_in, :self.d_out].set(w.astype(jnp.float32))
        bp = jnp.zeros((1, self.out_pad), jnp.float32)
        bp = bp.at[0, :self.d_out].set(b.astype(jnp.float32))
        self.w = wp.astype(jnp.bfloat16)
        self.b = bp
        self.relu = bool(relu)
        self.name = name
        self._hooks = []

    def register_forward_hook(self, fn):
        self._hooks.append(fn)
        return self

    def run_hooks(self, inputs, output):
        for h in self._hooks:
            h(self, inputs, output)

    def __call__(self, x):
        out = run_fused(x, [self])[0]
        self.run_hooks((x,), out)
        return out


class PallasSequential:
    def __init__(self, layers):
        self._layers = list(layers)

    def children(self):
        return list(self._layers)

    def named_modules(self):
        return [(l.name, l) for l in self._layers]

    def forward_prefix(self, x, upto):
        """Fused forward through layers [0..upto]; fires hooks on layer `upto`.
        Layers after `upto` (dead work for the extractor) are skipped."""
        layers = self._layers[: upto + 1]
        out = run_fused(x, layers)[0]
        layers[-1].run_hooks((x,), out)
        return out

    def __call__(self, x):
        # Full forward in ONE fused pallas_call: hooked layers' activations are
        # emitted as extra kernel outputs instead of segmenting the network, so
        # hook-free intermediates AND hooked activations never force an extra
        # launch / HBM round trip of the activation into the next segment.
        layers = self._layers
        n = len(layers)
        capture = tuple(i for i in range(n - 1) if layers[i]._hooks)
        outs = run_fused(x, layers, capture_idxs=capture)
        final = outs[0]
        for idx, act in zip(capture, outs[1:]):
            # TODO(synk): fused execution passes the network input (not the exact
            # per-layer input) to hooks; this extractor's hook only reads `output`.
            layers[idx].run_hooks((x,), act)
        if layers[-1]._hooks:
            layers[-1].run_hooks((x,), final)
        return final


class HiddenLayerExtractor:
    """JAX/Pallas port of the PyTorch HiddenLayerExtractor.

    Keeps the hook-registration semantics, but the computation runs as ONE
    fused pallas_call covering only the layers up to the hooked layer."""

    def __init__(self, net, layer=-2):
        self.net = net
        self.layer = layer
        self.hidden = None
        self.hook_registered = False

    def _find_layer_index(self):
        children = self.net.children()
        if isinstance(self.layer, str):
            names = [n for n, _ in self.net.named_modules()]
            return names.index(self.layer) if self.layer in names else None
        elif isinstance(self.layer, int):
            if -len(children) <= self.layer < len(children):
                return self.layer % len(children)
            return None
        return None

    def _find_layer(self):
        idx = self._find_layer_index()
        return None if idx is None else self.net.children()[idx]

    def _hook(self, _, __, output):
        self.hidden = output

    def _register_hook(self):
        layer = self._find_layer()
        assert layer is not None, f'hidden layer ({self.layer}) not found'
        layer.register_forward_hook(self._hook)
        self.hook_registered = True

    def forward(self, x):
        if self.layer == -1:
            return self.net(x)
        if not self.hook_registered:
            self._register_hook()
        idx = self._find_layer_index()
        _ = self.net.forward_prefix(x, idx)   # fused; head layers are skipped
        hidden = self.hidden
        self.hidden = None
        assert hidden is not None, \
            f'hidden layer {self.layer} never emitted an output'
        return hidden

    __call__ = forward


# ----------------------------------------------------------------------------
# Driver
# ----------------------------------------------------------------------------
def build_net(key, d_in=32, d_hidden=64, d_out=16):
    k0, k1, k2, k3, k4, k5 = jax.random.split(key, 6)
    s0 = 1.0 / jnp.sqrt(d_in)
    s1 = 1.0 / jnp.sqrt(d_hidden)
    w0 = jax.random.normal(k0, (d_in, d_hidden), jnp.float32) * s0
    b0 = jax.random.normal(k1, (d_hidden,), jnp.float32) * s0
    w1 = jax.random.normal(k2, (d_hidden, d_hidden), jnp.float32) * s1
    b1 = jax.random.normal(k3, (d_hidden,), jnp.float32) * s1
    w2 = jax.random.normal(k4, (d_hidden, d_out), jnp.float32) * s1
    b2 = jax.random.normal(k5, (d_out,), jnp.float32) * s1
    l0 = PallasLinear(w0, b0, relu=True, name="block0", in_pad=d_in)
    l1 = PallasLinear(w1, b1, relu=True, name="block1", in_pad=l0.out_pad)
    l2 = PallasLinear(w2, b2, relu=False, name="head", in_pad=l1.out_pad)
    net = PallasSequential([l0, l1, l2])
    params = (w0, b0, w1, b1, w2, b2)
    return net, params


def reference_hidden(x, params):
    """Same math as the fused kernel: bf16 MXU operands, f32 accumulate/bias/ReLU."""
    w0, b0, w1, b1, _, _ = params
    bf = jnp.bfloat16
    h0 = jnp.maximum(
        jnp.dot(x.astype(bf), w0.astype(bf), preferred_element_type=jnp.float32) + b0, 0.0)
    h1 = jnp.maximum(
        jnp.dot(h0.astype(bf), w1.astype(bf), preferred_element_type=jnp.float32) + b1, 0.0)
    return h1  # output of children[-2]


def reference_forward(x, params):
    _, _, _, _, w2, b2 = params
    bf = jnp.bfloat16
    h1 = reference_hidden(x, params)
    return jnp.dot(h1.astype(bf), w2.astype(bf), preferred_element_type=jnp.float32) + b2


if __name__ == "__main__":
    key = jax.random.PRNGKey(0)
    k_net, k_x = jax.random.split(key)

    B, D_IN = 8, 32
    net, params = build_net(k_net, d_in=D_IN, d_hidden=64, d_out=16)
    extractor = HiddenLayerExtractor(net, layer=-2)

    x = jax.random.normal(k_x, (B, D_IN), jnp.float32)

    # Extractor path (fused prefix, head layer skipped).
    hidden = jax.block_until_ready(extractor(x))
    ref_h = reference_hidden(x, params)
    assert hidden.shape == (B, 64), hidden.shape
    assert jnp.allclose(hidden, ref_h, atol=2e-3, rtol=2e-3), \
        float(jnp.max(jnp.abs(hidden - ref_h)))

    # String-addressed layer gives the same hidden activation.
    extractor_by_name = HiddenLayerExtractor(net, layer="block1")
    hidden2 = jax.block_until_ready(extractor_by_name(x))
    assert jnp.allclose(hidden, hidden2, atol=1e-5, rtol=1e-5)

    # Full forward path: one kernel emits final output + hooked activation.
    full = jax.block_until_ready(net(x))
    ref_f = reference_forward(x, params)
    assert full.shape == (B, 16), full.shape
    assert jnp.allclose(full, ref_f, atol=2e-3, rtol=2e-3), \
        float(jnp.max(jnp.abs(full - ref_f)))
    assert extractor.hidden is not None                # hook fired in fused forward
    assert jnp.allclose(extractor.hidden, hidden, atol=1e-5, rtol=1e-5)

    print("KERNEL_OK")
</pallas_src>

<mosaic_0001>
module attributes {stable_mosaic.version = 11 : i64} {
  func.func @_fused_mlp_kernel(%arg0: i32, %arg1: memref<8x32xf32, #tpu.memory_space<vmem>>, %arg2: memref<32x128xbf16, #tpu.memory_space<vmem>>, %arg3: memref<1x128xf32, #tpu.memory_space<vmem>>, %arg4: memref<128x128xbf16, #tpu.memory_space<vmem>>, %arg5: memref<1x128xf32, #tpu.memory_space<vmem>>, %arg6: memref<8x64xf32, #tpu.memory_space<vmem>>) attributes {dimension_semantics = [#tpu.dimension_semantics<parallel>], iteration_bounds = array<i64: 1>, scalar_prefetch = 0 : i64, scratch_operands = 0 : i64, tpu.core_type = #tpu.core_type<tc>, window_params = [{transform_indices = @transform_0, window_bounds = array<i64: 8, 32>}, {pipeline_mode = #tpu.pipeline_mode<synchronous>, transform_indices = @transform_1, window_bounds = array<i64: 32, 128>}, {pipeline_mode = #tpu.pipeline_mode<synchronous>, transform_indices = @transform_2, window_bounds = array<i64: 1, 128>}, {pipeline_mode = #tpu.pipeline_mode<synchronous>, transform_indices = @transform_3, window_bounds = array<i64: 128, 128>}, {pipeline_mode = #tpu.pipeline_mode<synchronous>, transform_indices = @transform_4, window_bounds = array<i64: 1, 128>}, {transform_indices = @transform_5, window_bounds = array<i64: 8, 64>}]} {
    %c0 = arith.constant 0 : index
    %c0_0 = arith.constant 0 : index
    %0 = vector.load %arg1[%c0, %c0_0] : memref<8x32xf32, #tpu.memory_space<vmem>>, vector<8x32xf32>
    %c0_1 = arith.constant 0 : index
    %c0_2 = arith.constant 0 : index
    %1 = vector.load %arg2[%c0_1, %c0_2] : memref<32x128xbf16, #tpu.memory_space<vmem>>, vector<32x128xbf16>
    %c0_3 = arith.constant 0 : index
    %c0_4 = arith.constant 0 : index
    %2 = vector.load %arg3[%c0_3, %c0_4] : memref<1x128xf32, #tpu.memory_space<vmem>>, vector<1x128xf32>
    %3 = arith.truncf %0 : vector<8x32xf32> to vector<8x32xbf16>
    %cst = arith.constant dense<0.000000e+00> : vector<8x128xf32>
    %4 = tpu.matmul %3, %1, %cst {dimension_numbers = #tpu.dot_dimension_numbers<[1], [0], [0], [1], [0, 0, 1, 1], [], []>} : vector<8x32xbf16>, vector<32x128xbf16>, vector<8x128xf32> -> vector<8x128xf32>
    %5 = vector.broadcast %2 : vector<1x128xf32> to vector<8x128xf32>
    %6 = arith.addf %4, %5 : vector<8x128xf32>
    %cst_5 = arith.constant 0.000000e+00 : f32
    %7 = vector.broadcast %cst_5 : f32 to vector<8x128xf32>
    %8 = arith.maximumf %6, %7 : vector<8x128xf32>
    %c0_6 = arith.constant 0 : index
    %c0_7 = arith.constant 0 : index
    %9 = vector.load %arg4[%c0_6, %c0_7] : memref<128x128xbf16, #tpu.memory_space<vmem>>, vector<128x128xbf16>
    %c0_8 = arith.constant 0 : index
    %c0_9 = arith.constant 0 : index
    %10 = vector.load %arg5[%c0_8, %c0_9] : memref<1x128xf32, #tpu.memory_space<vmem>>, vector<1x128xf32>
    %11 = arith.truncf %8 : vector<8x128xf32> to vector<8x128xbf16>
    %cst_10 = arith.constant dense<0.000000e+00> : vector<8x128xf32>
    %12 = tpu.matmul %11, %9, %cst_10 {dimension_numbers = #tpu.dot_dimension_numbers<[1], [0], [0], [1], [0, 0, 1, 1], [], []>} : vector<8x128xbf16>, vector<128x128xbf16>, vector<8x128xf32> -> vector<8x128xf32>
    %13 = vector.broadcast %10 : vector<1x128xf32> to vector<8x128xf32>
    %14 = arith.addf %12, %13 : vector<8x128xf32>
    %cst_11 = arith.constant 0.000000e+00 : f32
    %15 = vector.broadcast %cst_11 : f32 to vector<8x128xf32>
    %16 = arith.maximumf %14, %15 : vector<8x128xf32>
    %17 = vector.extract_strided_slice %16 {offsets = [0, 0], sizes = [8, 64], strides = [1, 1]} : vector<8x128xf32> to vector<8x64xf32>
    %c0_12 = arith.constant 0 : index
    %c0_13 = arith.constant 0 : index
    %18 = vector.load %arg6[%c0_12, %c0_13] : memref<8x64xf32, #tpu.memory_space<vmem>>, vector<8x64xf32>
    tpu.vector_store %arg6[%c0_12, %c0_13], %17 {strides = array<i32>} : memref<8x64xf32, #tpu.memory_space<vmem>>, vector<8x64xf32>,
    return
  }
  func.func @transform_0(%arg0: i32) -> (i32, i32) {
    %c0_i32 = arith.constant 0 : i32
    %c0_i32_0 = arith.constant 0 : i32
    return %arg0, %c0_i32 : i32, i32
  }
  func.func @transform_1(%arg0: i32) -> (i32, i32) {
    %c0_i32 = arith.constant 0 : i32
    %c0_i32_0 = arith.constant 0 : i32
    %c0_i32_1 = arith.constant 0 : i32
    return %c0_i32, %c0_i32_0 : i32, i32
  }
  func.func @transform_2(%arg0: i32) -> (i32, i32) {
    %c0_i32 = arith.constant 0 : i32
    %c0_i32_0 = arith.constant 0 : i32
    %c0_i32_1 = arith.constant 0 : i32
    return %c0_i32, %c0_i32_0 : i32, i32
  }
  func.func @transform_3(%arg0: i32) -> (i32, i32) {
    %c0_i32 = arith.constant 0 : i32
    %c0_i32_0 = arith.constant 0 : i32
    %c0_i32_1 = arith.constant 0 : i32
    return %c0_i32, %c0_i32_0 : i32, i32
  }
  func.func @transform_4(%arg0: i32) -> (i32, i32) {
    %c0_i32 = arith.constant 0 : i32
    %c0_i32_0 = arith.constant 0 : i32
    %c0_i32_1 = arith.constant 0 : i32
    return %c0_i32, %c0_i32_0 : i32, i32
  }
  func.func @transform_5(%arg0: i32) -> (i32, i32) {
    %c0_i32 = arith.constant 0 : i32
    %c0_i32_0 = arith.constant 0 : i32
    return %arg0, %c0_i32 : i32, i32
  }
}

</mosaic_0001>

<bundles_post_ra>
// kernel: _fused_mlp.1
= control target key start
LH: loop header
LB: loop body
LE: loop exit
PB: predicated region body
PF: predicated region fallthrough
CT: control target
= control target key end

     0   :  { %10 = vsyncpa [#allocation3], 0  ;;  %s611_s0 = inlined_call_operand.hbm [shape: f32[8,32], index: 0, kind: input, shape index: {}]   ;;  %s612_s1 = inlined_call_operand.hbm [shape: bf16[32,128], index: 1, kind: input, shape index: {}]   ;;  %s613_s2 = inlined_call_operand.hbm [shape: f32[1,128], index: 2, kind: input, shape index: {}]   ;;  %s614_s3 = inlined_call_operand.hbm [shape: bf16[128,128], index: 3, kind: input, shape index: {}]   ;;  %s615_s4 = inlined_call_operand.hbm [shape: f32[1,128], index: 4, kind: input, shape index: {}]   ;;  %s616_s5 = inlined_call_operand.hbm [shape: f32[8,64], index: 5, kind: output, shape index: {}]  }
   0x1   :  { %11 = vsyncpa [#allocation6], 0 }
   0x2   :  { %12 = vsyncpa [#allocation9], 0 }
   0x3   :  { %13 = vsyncpa [#allocation4], 0  ;;  %s499_s18 = smov [#allocation5]   ;;  %s359_s22 = scalar_lea.hbm %s612_s1, 256 }
   0x4   :  { %s29_s19 = sshll.u32 %s499_s18, 4  ;;  %p360_p0 = scmp.ne.s32.totalorder %s612_s1, %s359_s22  ;;  %s30_s19 = int_to_ptr.vmem [resolvable:$true] %s29_s19 }
   0x5   :  { %p363_p1 = scmp.lt.u32.totalorder %s359_s22, %s612_s1 }
   0x7   :  { %p365_p2 = pnand %p363_p1, %p360_p0 }
   0x9   :  { %368 = shalt.err (!%p365_p2)
}
   0xa   :  { %s369_s27 = scalar_lea.vmem %s30_s19, 256  ;;  %p374_p4 = scmp.lt.s32.totalorder %s30_s19, %s30_s19 }
   0xb   :  { %p370_p3 = scmp.ne.s32.totalorder %s30_s19, %s369_s27  ;;  %p375_p5 = scmp.lt.s32.totalorder %s369_s27, %s369_s27 }
   0xd   :  { %p376_p6 = por %p375_p5, %p374_p4 }
   0xf   :  { %p377_p7 = pnand %p376_p6, %p370_p3 }
  0x11   :  { %380 = shalt.err (!%p377_p7)
}
  0x12   :  { %s500_s28 = smov 64   ;;  %s501_s29 = smov 4  }
  0x13   :  { %35 = dma.hbm_to_vmem [thread:$0]  %s612_s1, 256, %s30_s19, [#allocation6], %s500_s28, %s500_s28, %s501_s29  }
  0x14   :  { %s502_s7 = smov [#allocation8]   ;;  %s503_s9 = smov [#allocation2]  }
  0x15   :  { %s51_s8 = sshll.u32 %s502_s7, 4  ;;  %s20_s10 = sshll.u32 %s503_s9, 4  ;;  %s52_s8 = int_to_ptr.vmem [resolvable:$true] %s51_s8  ;;  %s21_s10 = int_to_ptr.vmem [resolvable:$true] %s20_s10 }
  0x16   :  { %s381_s13 = scalar_lea.hbm %s614_s3, 1024 }
  0x17   :  { %p382_p8 = scmp.ne.s32.totalorder %s614_s3, %s381_s13  ;;  %p385_p9 = scmp.lt.u32.totalorder %s381_s13, %s614_s3 }
  0x19   :  { %p387_p10 = pnand %p385_p9, %p382_p8 }
  0x1b   :  { %390 = shalt.err (!%p387_p10)
}
  0x1c   :  { %s391_s1 = scalar_lea.vmem %s52_s8, 1024  ;;  %p396_p12 = scmp.lt.s32.totalorder %s52_s8, %s52_s8 }
  0x1d   :  { %p392_p11 = scmp.ne.s32.totalorder %s52_s8, %s391_s1  ;;  %p397_p13 = scmp.lt.s32.totalorder %s391_s1, %s391_s1 }
  0x1f   :  { %p398_p0 = por %p397_p13, %p396_p12 }
  0x21   :  { %p399_p1 = pnand %p398_p0, %p392_p11 }
  0x23   :  { %402 = shalt.err (!%p399_p1)
}
  0x24   :  { %57 = dma.hbm_to_vmem [thread:$0]  %s614_s3, 1024, %s52_s8, [#allocation9], %s500_s28, %s500_s28, %s501_s29  }
  0x25   :  { %s403_s22 = scalar_lea.hbm %s611_s0, 128 }
  0x26   :  { %p404_p2 = scmp.ne.s32.totalorder %s611_s0, %s403_s22  ;;  %p407_p3 = scmp.lt.u32.totalorder %s403_s22, %s611_s0 }
  0x28   :  { %p409_p4 = pnand %p407_p3, %p404_p2 }
  0x2a   :  { %412 = shalt.err (!%p409_p4)
}
  0x2b   :  { %s413_s27 = scalar_lea.vmem %s21_s10, 128  ;;  %p418_p6 = scmp.lt.s32.totalorder %s21_s10, %s21_s10 }
  0x2c   :  { %p414_p5 = scmp.ne.s32.totalorder %s21_s10, %s413_s27  ;;  %p419_p7 = scmp.lt.s32.totalorder %s413_s27, %s413_s27 }
  0x2e   :  { %p420_p8 = por %p419_p7, %p418_p6 }
  0x30   :  { %p421_p9 = pnand %p420_p8, %p414_p5 }
  0x32   :  { %424 = shalt.err (!%p421_p9)
}
  0x33   :  { %23 = dma.hbm_to_vmem [thread:$0]  %s611_s0, 128, %s21_s10, [#allocation3]  }
  0x34   :  { %s504_s29 = smov [#allocation7]   ;;  %s505_s6 = smov [#allocation10]  }
  0x35   :  { %s42_s30 = sshll.u32 %s504_s29, 4  ;;  %s64_s7 = sshll.u32 %s505_s6, 4  ;;  %s43_s30 = int_to_ptr.vmem [resolvable:$true] %s42_s30  ;;  %s65_s7 = int_to_ptr.vmem [resolvable:$true] %s64_s7 }
  0x36   :  { %s425_s11 = scalar_lea.hbm %s613_s2, 16 }
  0x37   :  { %p426_p10 = scmp.ne.s32.totalorder %s613_s2, %s425_s11  ;;  %p429_p11 = scmp.lt.u32.totalorder %s425_s11, %s613_s2 }
  0x39   :  { %p431_p12 = pnand %p429_p11, %p426_p10 }
  0x3b   :  { %434 = shalt.err (!%p431_p12)
}
  0x3c   :  { %s435_s0 = scalar_lea.vmem %s43_s30, 16  ;;  %s439_s10 = scalar_lea.vmem %s43_s30, 32 }
  0x3d   :  { %p436_p13 = scmp.ne.s32.totalorder %s43_s30, %s435_s0  ;;  %p440_p0 = scmp.lt.s32.totalorder %s43_s30, %s43_s30 }
  0x3e   :  { %p441_p1 = scmp.lt.s32.totalorder %s439_s10, %s435_s0 }
  0x40   :  { %p442_p2 = por %p441_p1, %p440_p0 }
  0x42   :  { %p443_p3 = pnand %p442_p2, %p436_p13 }
  0x44   :  { %446 = shalt.err (!%p443_p3)
}
  0x45   :  { %45 = dma.hbm_to_vmem [thread:$0]  %s613_s2, 16, %s43_s30, [#allocation6]  }
  0x46   :  { %s447_s19 = scalar_lea.hbm %s615_s4, 16 }
  0x47   :  { %p448_p4 = scmp.ne.s32.totalorder %s615_s4, %s447_s19  ;;  %p451_p5 = scmp.lt.u32.totalorder %s447_s19, %s615_s4 }
  0x49   :  { %p453_p6 = pnand %p451_p5, %p448_p4 }
  0x4b   :  { %456 = shalt.err (!%p453_p6)
}
  0x4c   :  { %s457_s24 = scalar_lea.vmem %s65_s7, 16  ;;  %s461_s25 = scalar_lea.vmem %s65_s7, 32 }
  0x4d   :  { %p458_p7 = scmp.ne.s32.totalorder %s65_s7, %s457_s24  ;;  %p462_p8 = scmp.lt.s32.totalorder %s65_s7, %s65_s7 }
  0x4e   :  { %p463_p9 = scmp.lt.s32.totalorder %s461_s25, %s457_s24 }
  0x50   :  { %p464_p10 = por %p463_p9, %p462_p8 }
  0x52   :  { %p465_p11 = pnand %p464_p10, %p458_p7 }
  0x54   :  { %468 = shalt.err (!%p465_p11)
}
  0x55   :  { %67 = dma.hbm_to_vmem [thread:$0]  %s615_s4, 16, %s65_s7, [#allocation9]  }
  0x56   :  { %491 = dma.done.wait [#allocation3], 128  }
  0x57   :  { %492 = vsyncadd [#allocation3], 4294967168 }
  0x58   :  { %493 = dma.done.wait [#allocation6], 272  }
  0x59   :  { %494 = vsyncadd [#allocation6], 4294967024 }
  0x5a   :  { %495 = dma.done.wait [#allocation9], 1040  }
  0x5b   :  { %496 = vsyncadd [#allocation9], 4294966256  ;;  %v506_v0 = vmov 0.0   ;;  %vm507_vm0 = vmmov 0   ;;  %v349_v1 = vld [vmem:[#allocation5] sm:$0xff]   ;;  %v350_v2 = vld [vmem:[#allocation5 + $0x8] sm:$0xff]  }
  0x5c   :  { %311 = vmatprep.subr.bf16.mxu0 %v506_v0  ;;  %315 = vmatprep.mubr.msk.bf16.mxu0 %vm507_vm0, %v506_v0  ;;  %v84_v3 = vld [vmem:[#allocation2] sm:$0xff]  ;;  %vm109_vm1 = vcmask 261120   ;;  %v353_v7 = vld [vmem:[#allocation8 + $0x10] sm:$0xff]   ;;  %v354_v8 = vld [vmem:[#allocation8 + $0x18] sm:$0xff]   ;;  %s508_s4 = smov [#allocation11]   ;;  %vm267_vm2 = vcmask 523264  }
  0x5d   :  { %319 = vmatprep.subr.bf16.mxu1 %v506_v0  ;;  %335 = vmatprep.mubr.msk.bf16.mxu1 %vm507_vm0, %v506_v0  ;;  %v351_v4 = vld [vmem:[#allocation8] sm:$0xff]   ;;  %v90_v5 = vpack.c.bf16 %v84_v3, %v84_v3  ;;  %v352_v6 = vld [vmem:[#allocation8 + $0x8] sm:$0xff]   ;;  %v357_v11 = vld [vmem:[#allocation8 + $0x30] sm:$0xff]   ;;  %s275_s27 = sshll.u32 %s508_s4, 4  ;;  %s276_s27 = int_to_ptr.vmem [resolvable:$true] %s275_s27 }
  0x5e   :  { %312 = vmatpush3.bf16.msra.mxu0 %v349_v1  ;;  %320 = vmatpush3.bf16.msra.mxu1 %v351_v4  ;;  %v355_v9 = vld [vmem:[#allocation8 + $0x20] sm:$0xff]   ;;  %v356_v10 = vld [vmem:[#allocation8 + $0x28] sm:$0xff]   ;;  %v358_v12 = vld [vmem:[#allocation8 + $0x38] sm:$0xff]   ;;  %s469_s3 = scalar_lea.vmem %s276_s27, 128  ;;  %p474_p13 = scmp.lt.s32.totalorder %s276_s27, %s276_s27 }
  0x5f   :  { %313 = vmatprep.subr.bf16.mxu0 %v506_v0  ;;  %321 = vmatprep.subr.bf16.mxu1 %v506_v0  ;;  %v286_v13 = vld [vmem:[#allocation7] ss:$0 sm:$0xff]  ;;  %v290_v21 = vld [vmem:[#allocation10] ss:$0 sm:$0xff]  ;;  %p470_p12 = scmp.ne.s32.totalorder %s276_s27, %s469_s3  ;;  %p475_p0 = scmp.lt.s32.totalorder %s469_s3, %s469_s3 }
  0x61   :  { %p476_p1 = por %p475_p0, %p474_p13 }
  0x62   :  { %314 = vmatpush3.bf16.msra.mxu0 %v350_v2  ;;  %322 = vmatpush3.bf16.msra.mxu1 %v352_v6 }
  0x63   :  { %323 = vmatprep.subr.bf16.mxu1 %v506_v0  ;;  %p477_p2 = pnand %p476_p1, %p470_p12 }
  0x65   :  { %316 = vmatmul.mubr.msk.bf16.vlgmr.msra.gmra.mrb[0].mxu0 %vm109_vm1, %v90_v5 }
  0x66   :  { %324 = vmatpush3.bf16.msra.mxu1 %v353_v7 }
  0x67   :  { %325 = vmatprep.subr.bf16.mxu1 %v506_v0 }
  0x6a   :  { %326 = vmatpush3.bf16.msra.mxu1 %v354_v8 }
  0x6b   :  { %327 = vmatprep.subr.bf16.mxu1 %v506_v0 }
  0x6e   :  { %328 = vmatpush3.bf16.msra.mxu1 %v355_v9 }
  0x6f   :  { %329 = vmatprep.subr.bf16.mxu1 %v506_v0 }
  0x72   :  { %330 = vmatpush3.bf16.msra.mxu1 %v356_v10 }
  0x73   :  { %331 = vmatprep.subr.bf16.mxu1 %v506_v0 }
  0x76   :  { %332 = vmatpush3.bf16.msra.mxu1 %v357_v11 }
  0x77   :  { %333 = vmatprep.subr.bf16.mxu1 %v506_v0 }
  0x7a   :  { %334 = vmatpush3.bf16.msra.mxu1 %v358_v12 }
 0x138   :  { %v147_v14 = vpop.f32.mrb[0].mxu0 }
 0x139   :  { %v148_v15 = vadd.f32 %v286_v13, %v147_v14  ;;  %v317_v16 = vpop.f32.mrb[1].mxu0 }
 0x13a   :  { %v150_v17 = vpop.f32.mrb[2].mxu0 }
 0x13b   :  { %v153_v18 = vmax.f32 %v148_v15, 0.0  ;;  %v318_v19 = vpop.f32.mrb[3].mxu0 }
 0x13d   :  { %v171_v20 = vpack.c.bf16 %v153_v18, %v153_v18 }
 0x13f   :  { %336 = vmatmul.mubr.bf16.vlgmr.msra.gmra.mrb[0].mxu1 %v171_v20 }
 0x212   :  { %v260_v22 = vpop.f32.mrb[0].mxu1 }
 0x213   :  { %v261_v23 = vadd.f32 %v290_v21, %v260_v22  ;;  %v337_v24 = vpop.f32.mrb[1].mxu1 }
 0x214   :  { %v263_v25 = vpop.f32.mrb[2].mxu1 }
 0x215   :  { %v266_v26 = vmax.f32 %v261_v23, 0.0  ;;  %v338_v27 = vpop.f32.mrb[3].mxu1 }
 0x217   :  { %268 = vst.msk [vmem:[#allocation11] sm:$0xff] %vm267_vm2, %v266_v26 }
 0x218   :  { %480 = shalt.err (!%p477_p2)
}
 0x219   :  { %s481_s30 = scalar_lea.hbm %s616_s5, 128 }
 0x21a   :  { %p482_p3 = scmp.ne.s32.totalorder %s616_s5, %s481_s30  ;;  %p485_p4 = scmp.lt.u32.totalorder %s481_s30, %s616_s5 }
 0x21c   :  { %p487_p5 = pnand %p485_p4, %p482_p3 }
 0x21e   :  { %490 = shalt.err (!%p487_p5)
}
 0x21f   :  { %278 = dma.vmem_to_hbm [thread:$0]  %s276_s27, 128, %s616_s5, [#allocation4]  }
 0x220   :  { %497 = dma.done.wait [#allocation4], 128  }
 0x221   :  { %498 = vsyncadd [#allocation4], 4294967168 }
 0x222   :  { %282 = vsyncpa [#allocation3], 1 }
 0x223   :  { %283 = vsyncpa [#allocation6], 1 }
 0x224   :  { %284 = vsyncpa [#allocation9], 1 }
 0x225   :  { %285 = vsyncpa [#allocation4], 1 }

</bundles_post_ra>
